<compile_context>
chip_gen: v7x
topology: tpu7x:2x2x1
jax: 0.10.0
libtpu: 0.0.40
codegen_flags: <defaults>
</compile_context>

<pallas_src>
import jax
import jax.numpy as jnp
from jax.experimental import pallas as pl
from jax.experimental.pallas import tpu as pltpu

NUM_USER_FEATURES = 31
NUM_ITEM_FEATURES = 35
NUM_OUTPUTS = 64
H1 = 256
H2 = 128
EPS = 1e-12  # matches torch.nn.functional.normalize default eps


def _round_up(x, m):
    return ((x + m - 1) // m) * m


def recommendation_kernel(
    u_ref, i_ref,                 # (TB, 31) f32, (TB, 35) f32
    uw1_ref, iw1_ref, b1_ref,     # (31,256) bf16, (35,256) bf16, (1,512) f32
    w2_ref, b2_ref,               # (512,256) bf16 block-diag, (1,256) f32
    w3_ref, b3_ref,               # (256,128) bf16 block-diag, (1,128) f32
    out_ref,                      # (TB, 1) f32
):
    # fc1: one small-K matmul per tower; results lane-concatenated at the
    # 256-lane boundary (vreg-aligned -> free).
    hu = jnp.dot(u_ref[...].astype(jnp.bfloat16), uw1_ref[...],
                 preferred_element_type=jnp.float32)
    hi = jnp.dot(i_ref[...].astype(jnp.bfloat16), iw1_ref[...],
                 preferred_element_type=jnp.float32)
    h1 = jnp.concatenate([hu, hi], axis=1)                       # (TB, 512)
    h1 = jnp.maximum(h1 + b1_ref[...], 0.0).astype(jnp.bfloat16)

    # fc2 fused block-diagonally across both towers: K=512, N=256.
    h2 = jnp.dot(h1, w2_ref[...], preferred_element_type=jnp.float32) + b2_ref[...]
    h2 = jnp.maximum(h2, 0.0).astype(jnp.bfloat16)                # (TB, 256)

    # fc3 fused block-diagonally: single K=256, N=128 matmul -> [vu | vm].
    v = jnp.dot(h2, w3_ref[...], preferred_element_type=jnp.float32) + b3_ref[...]

    vu = v[:, :NUM_OUTPUTS]       # (TB, 64) f32
    vm = v[:, NUM_OUTPUTS:]       # (TB, 64) f32

    # Fused normalize-then-dot:
    #   <vu/max(|vu|,eps), vm/max(|vm|,eps)>
    # == <vu,vm> * rsqrt(max(|vu|^2, eps^2)) * rsqrt(max(|vm|^2, eps^2))
    d = jnp.sum(vu * vm, axis=1, keepdims=True)
    su = jnp.sum(vu * vu, axis=1, keepdims=True)
    sm = jnp.sum(vm * vm, axis=1, keepdims=True)
    inv_u = jax.lax.rsqrt(jnp.maximum(su, EPS * EPS))
    inv_m = jax.lax.rsqrt(jnp.maximum(sm, EPS * EPS))
    out_ref[...] = d * inv_u * inv_m


def prepare_kernel_params(p):
    """Build bf16 kernel weights ONCE (hoisted out of the per-call path):
    fc2 / fc3 of both towers become block-diagonal fused matrices."""
    w2 = jnp.zeros((2 * H1, 2 * H2), jnp.float32)
    w2 = w2.at[:H1, :H2].set(p["uw2"])
    w2 = w2.at[H1:, H2:].set(p["iw2"])
    w3 = jnp.zeros((2 * H2, 2 * NUM_OUTPUTS), jnp.float32)
    w3 = w3.at[:H2, :NUM_OUTPUTS].set(p["uw3"])
    w3 = w3.at[H2:, NUM_OUTPUTS:].set(p["iw3"])
    return dict(
        uw1=p["uw1"].astype(jnp.bfloat16),
        iw1=p["iw1"].astype(jnp.bfloat16),
        b1=jnp.concatenate([p["ub1"], p["ib1"]], axis=1),   # (1, 512) f32
        w2=w2.astype(jnp.bfloat16),
        b2=jnp.concatenate([p["ub2"], p["ib2"]], axis=1),   # (1, 256) f32
        w3=w3.astype(jnp.bfloat16),
        b3=jnp.concatenate([p["ub3"], p["ib3"]], axis=1),   # (1, 128) f32
    )


def _choose_tile(B, tb):
    """Batch tile: multiple of 16 (bf16 sublane packing). For batches larger
    than one tiny tile, force >= 2 grid blocks (v7x has 2 TensorCores) and
    balance TB to minimize padded-tail waste."""
    B16 = _round_up(B, 16)
    if B16 <= 32:
        return B16, B16                      # single tiny block
    n_blocks = max(2, -(-B16 // tb))
    TB = _round_up(-(-B16 // n_blocks), 16)
    return TB, TB * n_blocks


def recommendation_forward(user_input, item_input, kernel_params, *, tb=1024):
    B = user_input.shape[0]
    TB, B_pad = _choose_tile(B, tb)
    n_blocks = B_pad // TB

    u = user_input.astype(jnp.float32)
    it = item_input.astype(jnp.float32)
    if B_pad != B:
        u = jnp.pad(u, ((0, B_pad - B), (0, 0)))
        it = jnp.pad(it, ((0, B_pad - B), (0, 0)))

    kp = kernel_params
    weight_args = (kp["uw1"], kp["iw1"], kp["b1"],
                   kp["w2"], kp["b2"], kp["w3"], kp["b3"])

    def batch_spec(shape):
        return pl.BlockSpec(shape, lambda i: (i, 0))

    def resident_spec(arr):
        # Constant index_map -> DMA'd once, stays VMEM-resident across grid steps.
        return pl.BlockSpec(arr.shape, lambda i: (0, 0))

    out = pl.pallas_call(
        recommendation_kernel,
        out_shape=jax.ShapeDtypeStruct((B_pad, 1), jnp.float32),
        grid_spec=pltpu.PrefetchScalarGridSpec(
            num_scalar_prefetch=0,
            grid=(n_blocks,),
            in_specs=[batch_spec((TB, NUM_USER_FEATURES)),
                      batch_spec((TB, NUM_ITEM_FEATURES))]
                     + [resident_spec(a) for a in weight_args],
            out_specs=batch_spec((TB, 1)),
        ),
        compiler_params=pltpu.CompilerParams(
            dimension_semantics=("parallel",),
        ),
    )(u, it, *weight_args)

    # TODO(synk): torch .squeeze() returns a 0-d tensor for B == 1; we always
    # return shape (B,) here.
    return out[:B, 0]


def _init_linear(key, fan_in, fan_out):
    # Deterministic init mimicking PyTorch nn.Linear default U[-1/sqrt(in), 1/sqrt(in)].
    kw, kb = jax.random.split(key)
    bound = 1.0 / jnp.sqrt(jnp.float32(fan_in))
    w = jax.random.uniform(kw, (fan_in, fan_out), jnp.float32, -bound, bound)
    b = jax.random.uniform(kb, (1, fan_out), jnp.float32, -bound, bound)
    return w, b


def init_params(key):
    keys = jax.random.split(key, 6)
    uw1, ub1 = _init_linear(keys[0], NUM_USER_FEATURES, H1)
    uw2, ub2 = _init_linear(keys[1], H1, H2)
    uw3, ub3 = _init_linear(keys[2], H2, NUM_OUTPUTS)
    iw1, ib1 = _init_linear(keys[3], NUM_ITEM_FEATURES, H1)
    iw2, ib2 = _init_linear(keys[4], H1, H2)
    iw3, ib3 = _init_linear(keys[5], H2, NUM_OUTPUTS)
    return dict(uw1=uw1, ub1=ub1, uw2=uw2, ub2=ub2, uw3=uw3, ub3=ub3,
                iw1=iw1, ib1=ib1, iw2=iw2, ib2=ib2, iw3=iw3, ib3=ib3)


def reference_forward(user_input, item_input, p):
    """Pure-JAX f32 reference matching the PyTorch module."""
    def mlp(x, w1, b1, w2, b2, w3, b3):
        h = jnp.maximum(x @ w1 + b1, 0.0)
        h = jnp.maximum(h @ w2 + b2, 0.0)
        return h @ w3 + b3
    vu = mlp(user_input, p["uw1"], p["ub1"], p["uw2"], p["ub2"], p["uw3"], p["ub3"])
    vm = mlp(item_input, p["iw1"], p["ib1"], p["iw2"], p["ib2"], p["iw3"], p["ib3"])
    vu = vu / jnp.maximum(jnp.linalg.norm(vu, axis=1, keepdims=True), EPS)
    vm = vm / jnp.maximum(jnp.linalg.norm(vm, axis=1, keepdims=True), EPS)
    return jnp.sum(vu * vm, axis=1)


if __name__ == "__main__":
    key = jax.random.PRNGKey(0)
    k_params, k_user, k_item = jax.random.split(key, 3)

    B = 8
    params = init_params(k_params)
    kernel_params = prepare_kernel_params(params)   # hoisted: built once, reused per call
    user_input = jax.random.normal(k_user, (B, NUM_USER_FEATURES), jnp.float32)
    item_input = jax.random.normal(k_item, (B, NUM_ITEM_FEATURES), jnp.float32)

    out = recommendation_forward(user_input, item_input, kernel_params)
    jax.block_until_ready(out)

    ref = reference_forward(user_input, item_input, params)
    assert out.shape == (B,)
    # bf16 matmul operands (f32 accumulation) -> relax tolerance vs f32 reference.
    assert jnp.allclose(out, ref, atol=2e-2, rtol=2e-2), (out, ref)

    print("KERNEL_OK")
</pallas_src>

<mosaic_0001>
module attributes {stable_mosaic.version = 11 : i64} {
  func.func @recommendation_kernel(%arg0: i32, %arg1: memref<16x31xf32, #tpu.memory_space<vmem>>, %arg2: memref<16x35xf32, #tpu.memory_space<vmem>>, %arg3: memref<31x256xbf16, #tpu.memory_space<vmem>>, %arg4: memref<35x256xbf16, #tpu.memory_space<vmem>>, %arg5: memref<1x512xf32, #tpu.memory_space<vmem>>, %arg6: memref<512x256xbf16, #tpu.memory_space<vmem>>, %arg7: memref<1x256xf32, #tpu.memory_space<vmem>>, %arg8: memref<256x128xbf16, #tpu.memory_space<vmem>>, %arg9: memref<1x128xf32, #tpu.memory_space<vmem>>, %arg10: memref<16x1xf32, #tpu.memory_space<vmem>>) attributes {dimension_semantics = [#tpu.dimension_semantics<parallel>], iteration_bounds = array<i64: 1>, scalar_prefetch = 0 : i64, scratch_operands = 0 : i64, tpu.core_type = #tpu.core_type<tc>, window_params = [{transform_indices = @transform_0, window_bounds = array<i64: 16, 31>}, {transform_indices = @transform_1, window_bounds = array<i64: 16, 35>}, {pipeline_mode = #tpu.pipeline_mode<synchronous>, transform_indices = @transform_2, window_bounds = array<i64: 31, 256>}, {pipeline_mode = #tpu.pipeline_mode<synchronous>, transform_indices = @transform_3, window_bounds = array<i64: 35, 256>}, {pipeline_mode = #tpu.pipeline_mode<synchronous>, transform_indices = @transform_4, window_bounds = array<i64: 1, 512>}, {pipeline_mode = #tpu.pipeline_mode<synchronous>, transform_indices = @transform_5, window_bounds = array<i64: 512, 256>}, {pipeline_mode = #tpu.pipeline_mode<synchronous>, transform_indices = @transform_6, window_bounds = array<i64: 1, 256>}, {pipeline_mode = #tpu.pipeline_mode<synchronous>, transform_indices = @transform_7, window_bounds = array<i64: 256, 128>}, {pipeline_mode = #tpu.pipeline_mode<synchronous>, transform_indices = @transform_8, window_bounds = array<i64: 1, 128>}, {transform_indices = @transform_9, window_bounds = array<i64: 16, 1>}]} {
    %c0 = arith.constant 0 : index
    %c0_0 = arith.constant 0 : index
    %0 = vector.load %arg1[%c0, %c0_0] : memref<16x31xf32, #tpu.memory_space<vmem>>, vector<16x31xf32>
    %1 = arith.truncf %0 : vector<16x31xf32> to vector<16x31xbf16>
    %c0_1 = arith.constant 0 : index
    %c0_2 = arith.constant 0 : index
    %2 = vector.load %arg3[%c0_1, %c0_2] : memref<31x256xbf16, #tpu.memory_space<vmem>>, vector<31x256xbf16>
    %cst = arith.constant dense<0.000000e+00> : vector<16x256xf32>
    %3 = tpu.matmul %1, %2, %cst {dimension_numbers = #tpu.dot_dimension_numbers<[1], [0], [0], [1], [0, 0, 1, 1], [], []>} : vector<16x31xbf16>, vector<31x256xbf16>, vector<16x256xf32> -> vector<16x256xf32>
    %c0_3 = arith.constant 0 : index
    %c0_4 = arith.constant 0 : index
    %4 = vector.load %arg2[%c0_3, %c0_4] : memref<16x35xf32, #tpu.memory_space<vmem>>, vector<16x35xf32>
    %5 = arith.truncf %4 : vector<16x35xf32> to vector<16x35xbf16>
    %c0_5 = arith.constant 0 : index
    %c0_6 = arith.constant 0 : index
    %6 = vector.load %arg4[%c0_5, %c0_6] : memref<35x256xbf16, #tpu.memory_space<vmem>>, vector<35x256xbf16>
    %cst_7 = arith.constant dense<0.000000e+00> : vector<16x256xf32>
    %7 = tpu.matmul %5, %6, %cst_7 {dimension_numbers = #tpu.dot_dimension_numbers<[1], [0], [0], [1], [0, 0, 1, 1], [], []>} : vector<16x35xbf16>, vector<35x256xbf16>, vector<16x256xf32> -> vector<16x256xf32>
    %8 = tpu.concatenate %3, %7 in 1 : vector<16x256xf32>, vector<16x256xf32> -> vector<16x512xf32>
    %c0_8 = arith.constant 0 : index
    %c0_9 = arith.constant 0 : index
    %9 = vector.load %arg5[%c0_8, %c0_9] : memref<1x512xf32, #tpu.memory_space<vmem>>, vector<1x512xf32>
    %10 = vector.broadcast %9 : vector<1x512xf32> to vector<16x512xf32>
    %11 = arith.addf %8, %10 : vector<16x512xf32>
    %cst_10 = arith.constant 0.000000e+00 : f32
    %12 = vector.broadcast %cst_10 : f32 to vector<16x512xf32>
    %13 = arith.maximumf %11, %12 : vector<16x512xf32>
    %14 = arith.truncf %13 : vector<16x512xf32> to vector<16x512xbf16>
    %c0_11 = arith.constant 0 : index
    %c0_12 = arith.constant 0 : index
    %15 = vector.load %arg6[%c0_11, %c0_12] : memref<512x256xbf16, #tpu.memory_space<vmem>>, vector<512x256xbf16>
    %cst_13 = arith.constant dense<0.000000e+00> : vector<16x256xf32>
    %16 = tpu.matmul %14, %15, %cst_13 {dimension_numbers = #tpu.dot_dimension_numbers<[1], [0], [0], [1], [0, 0, 1, 1], [], []>} : vector<16x512xbf16>, vector<512x256xbf16>, vector<16x256xf32> -> vector<16x256xf32>
    %c0_14 = arith.constant 0 : index
    %c0_15 = arith.constant 0 : index
    %17 = vector.load %arg7[%c0_14, %c0_15] : memref<1x256xf32, #tpu.memory_space<vmem>>, vector<1x256xf32>
    %18 = vector.broadcast %17 : vector<1x256xf32> to vector<16x256xf32>
    %19 = arith.addf %16, %18 : vector<16x256xf32>
    %cst_16 = arith.constant 0.000000e+00 : f32
    %20 = vector.broadcast %cst_16 : f32 to vector<16x256xf32>
    %21 = arith.maximumf %19, %20 : vector<16x256xf32>
    %22 = arith.truncf %21 : vector<16x256xf32> to vector<16x256xbf16>
    %c0_17 = arith.constant 0 : index
    %c0_18 = arith.constant 0 : index
    %23 = vector.load %arg8[%c0_17, %c0_18] : memref<256x128xbf16, #tpu.memory_space<vmem>>, vector<256x128xbf16>
    %cst_19 = arith.constant dense<0.000000e+00> : vector<16x128xf32>
    %24 = tpu.matmul %22, %23, %cst_19 {dimension_numbers = #tpu.dot_dimension_numbers<[1], [0], [0], [1], [0, 0, 1, 1], [], []>} : vector<16x256xbf16>, vector<256x128xbf16>, vector<16x128xf32> -> vector<16x128xf32>
    %c0_20 = arith.constant 0 : index
    %c0_21 = arith.constant 0 : index
    %25 = vector.load %arg9[%c0_20, %c0_21] : memref<1x128xf32, #tpu.memory_space<vmem>>, vector<1x128xf32>
    %26 = vector.broadcast %25 : vector<1x128xf32> to vector<16x128xf32>
    %27 = arith.addf %24, %26 : vector<16x128xf32>
    %28 = vector.extract_strided_slice %27 {offsets = [0, 0], sizes = [16, 64], strides = [1, 1]} : vector<16x128xf32> to vector<16x64xf32>
    %29 = vector.extract_strided_slice %27 {offsets = [0, 64], sizes = [16, 64], strides = [1, 1]} : vector<16x128xf32> to vector<16x64xf32>
    %30 = arith.mulf %28, %29 : vector<16x64xf32>
    %cst_22 = arith.constant dense<0.000000e+00> : vector<16xf32>
    %31 = vector.multi_reduction <add>, %30, %cst_22 [1] : vector<16x64xf32> to vector<16xf32>
    %32 = vector.shape_cast %31 : vector<16xf32> to vector<16x1xf32>
    %33 = arith.mulf %28, %28 : vector<16x64xf32>
    %cst_23 = arith.constant dense<0.000000e+00> : vector<16xf32>
    %34 = vector.multi_reduction <add>, %33, %cst_23 [1] : vector<16x64xf32> to vector<16xf32>
    %35 = vector.shape_cast %34 : vector<16xf32> to vector<16x1xf32>
    %36 = arith.mulf %29, %29 : vector<16x64xf32>
    %cst_24 = arith.constant dense<0.000000e+00> : vector<16xf32>
    %37 = vector.multi_reduction <add>, %36, %cst_24 [1] : vector<16x64xf32> to vector<16xf32>
    %38 = vector.shape_cast %37 : vector<16xf32> to vector<16x1xf32>
    %cst_25 = arith.constant 1.000000e-24 : f32
    %39 = vector.broadcast %cst_25 : f32 to vector<16x1xf32>
    %40 = arith.maximumf %35, %39 : vector<16x1xf32>
    %41 = math.rsqrt %40 : vector<16x1xf32>
    %cst_26 = arith.constant 1.000000e-24 : f32
    %42 = vector.broadcast %cst_26 : f32 to vector<16x1xf32>
    %43 = arith.maximumf %38, %42 : vector<16x1xf32>
    %44 = math.rsqrt %43 : vector<16x1xf32>
    %45 = arith.mulf %32, %41 : vector<16x1xf32>
    %46 = arith.mulf %45, %44 : vector<16x1xf32>
    %c0_27 = arith.constant 0 : index
    %c0_28 = arith.constant 0 : index
    %47 = vector.load %arg10[%c0_27, %c0_28] : memref<16x1xf32, #tpu.memory_space<vmem>>, vector<16x1xf32>
    tpu.vector_store %arg10[%c0_27, %c0_28], %46 {strides = array<i32>} : memref<16x1xf32, #tpu.memory_space<vmem>>, vector<16x1xf32>,
    return
  }
  func.func @transform_0(%arg0: i32) -> (i32, i32) {
    %c0_i32 = arith.constant 0 : i32
    %c0_i32_0 = arith.constant 0 : i32
    return %arg0, %c0_i32 : i32, i32
  }
  func.func @transform_1(%arg0: i32) -> (i32, i32) {
    %c0_i32 = arith.constant 0 : i32
    %c0_i32_0 = arith.constant 0 : i32
    return %arg0, %c0_i32 : i32, i32
  }
  func.func @transform_2(%arg0: i32) -> (i32, i32) {
    %c0_i32 = arith.constant 0 : i32
    %c0_i32_0 = arith.constant 0 : i32
    %c0_i32_1 = arith.constant 0 : i32
    return %c0_i32, %c0_i32_0 : i32, i32
  }
  func.func @transform_3(%arg0: i32) -> (i32, i32) {
    %c0_i32 = arith.constant 0 : i32
    %c0_i32_0 = arith.constant 0 : i32
    %c0_i32_1 = arith.constant 0 : i32
    return %c0_i32, %c0_i32_0 : i32, i32
  }
  func.func @transform_4(%arg0: i32) -> (i32, i32) {
    %c0_i32 = arith.constant 0 : i32
    %c0_i32_0 = arith.constant 0 : i32
    %c0_i32_1 = arith.constant 0 : i32
    return %c0_i32, %c0_i32_0 : i32, i32
  }
  func.func @transform_5(%arg0: i32) -> (i32, i32) {
    %c0_i32 = arith.constant 0 : i32
    %c0_i32_0 = arith.constant 0 : i32
    %c0_i32_1 = arith.constant 0 : i32
    return %c0_i32, %c0_i32_0 : i32, i32
  }
  func.func @transform_6(%arg0: i32) -> (i32, i32) {
    %c0_i32 = arith.constant 0 : i32
    %c0_i32_0 = arith.constant 0 : i32
    %c0_i32_1 = arith.constant 0 : i32
    return %c0_i32, %c0_i32_0 : i32, i32
  }
  func.func @transform_7(%arg0: i32) -> (i32, i32) {
    %c0_i32 = arith.constant 0 : i32
    %c0_i32_0 = arith.constant 0 : i32
    %c0_i32_1 = arith.constant 0 : i32
    return %c0_i32, %c0_i32_0 : i32, i32
  }
  func.func @transform_8(%arg0: i32) -> (i32, i32) {
    %c0_i32 = arith.constant 0 : i32
    %c0_i32_0 = arith.constant 0 : i32
    %c0_i32_1 = arith.constant 0 : i32
    return %c0_i32, %c0_i32_0 : i32, i32
  }
  func.func @transform_9(%arg0: i32) -> (i32, i32) {
    %c0_i32 = arith.constant 0 : i32
    %c0_i32_0 = arith.constant 0 : i32
    return %arg0, %c0_i32 : i32, i32
  }
}

</mosaic_0001>

<bundles_post_ra>
// kernel: tpu_custom_call.1
= control target key start
LH: loop header
LB: loop body
LE: loop exit
PB: predicated region body
PF: predicated region fallthrough
CT: control target
= control target key end

     0   :  { %14 = vsyncpa [#allocation3], 0  ;;  %s1675_s0 = inlined_call_operand.hbm [shape: f32[16,31], index: 0, kind: input, shape index: {}]   ;;  %s1676_s1 = inlined_call_operand.hbm [shape: f32[16,35], index: 1, kind: input, shape index: {}]   ;;  %s1677_s2 = inlined_call_operand.hbm [shape: bf16[31,256], index: 2, kind: input, shape index: {}]   ;;  %s1678_s3 = inlined_call_operand.hbm [shape: bf16[35,256], index: 3, kind: input, shape index: {}]   ;;  %s1679_s4 = inlined_call_operand.vmem [shape: f32[1,512], index: 4, kind: input, shape index: {}]   ;;  %s1680_s5 = inlined_call_operand.hbm [shape: bf16[512,256], index: 5, kind: input, shape index: {}]   ;;  %s1681_s6 = inlined_call_operand.vmem [shape: f32[1,256], index: 6, kind: input, shape index: {}]   ;;  %s1682_s7 = inlined_call_operand.hbm [shape: bf16[256,128], index: 7, kind: input, shape index: {}]   ;;  %s1683_s8 = inlined_call_operand.vmem [shape: f32[1,128], index: 8, kind: input, shape index: {}]   ;;  %s1684_s9 = inlined_call_operand.vmem [shape: f32[16,1], index: 9, kind: output, shape index: {}]  }
   0x1   :  { %15 = vsyncpa [#allocation5], 0 }
   0x2   :  { %16 = vsyncpa [#allocation8], 0 }
   0x3   :  { %17 = vsyncpa [#allocation11], 0  ;;  %s1464_s30 = smov [#allocation4]   ;;  %s1465_s11 = smov [#allocation7]  }
   0x4   :  { %s35_s10 = sshll.u32 %s1464_s30, 4  ;;  %s59_s12 = sshll.u32 %s1465_s11, 4  ;;  %s36_s10 = int_to_ptr.vmem [resolvable:$true] %s35_s10  ;;  %s1526_s12 = int_to_ptr.vmem [resolvable:$true] %s59_s12 }
   0x5   :  { %s1324_s15 = scalar_lea.hbm %s1676_s1, 256 }
   0x6   :  { %p1325_p0 = scmp.ne.s32.totalorder %s1676_s1, %s1324_s15  ;;  %p1328_p1 = scmp.lt.u32.totalorder %s1324_s15, %s1676_s1 }
   0x8   :  { %p1330_p2 = pnand %p1328_p1, %p1325_p0 }
   0xa   :  { %1333 = shalt.err (!%p1330_p2)
}
   0xb   :  { %s1334_s20 = scalar_lea.vmem %s36_s10, 256  ;;  %p1339_p4 = scmp.lt.s32.totalorder %s36_s10, %s36_s10 }
   0xc   :  { %p1335_p3 = scmp.ne.s32.totalorder %s36_s10, %s1334_s20  ;;  %p1340_p5 = scmp.lt.s32.totalorder %s1334_s20, %s1334_s20 }
   0xe   :  { %p1341_p6 = por %p1340_p5, %p1339_p4 }
  0x10   :  { %p1342_p7 = pnand %p1341_p6, %p1335_p3 }
  0x12   :  { %1345 = shalt.err (!%p1342_p7)
}
  0x13   :  { %s1466_s21 = smov 128   ;;  %s1467_s22 = smov 8  }
  0x14   :  { %41 = dma.hbm_to_vmem [thread:$0]  %s1676_s1, 256, %s36_s10, [#allocation5], %s1466_s21, %s1466_s21, %s1467_s22  }
  0x15   :  { %s1346_s27 = scalar_lea.hbm %s1678_s3, 640 }
  0x16   :  { %p1347_p8 = scmp.ne.s32.totalorder %s1678_s3, %s1346_s27  ;;  %p1350_p9 = scmp.lt.u32.totalorder %s1346_s27, %s1678_s3 }
  0x18   :  { %p1352_p10 = pnand %p1350_p9, %p1347_p8 }
  0x1a   :  { %1355 = shalt.err (!%p1352_p10)
}
  0x1b   :  { %s1356_s13 = scalar_lea.vmem %s1526_s12, 640  ;;  %p1361_p12 = scmp.lt.s32.totalorder %s1526_s12, %s1526_s12 }
  0x1c   :  { %p1357_p11 = scmp.ne.s32.totalorder %s1526_s12, %s1356_s13  ;;  %p1362_p13 = scmp.lt.s32.totalorder %s1356_s13, %s1356_s13 }
  0x1e   :  { %p1363_p0 = por %p1362_p13, %p1361_p12 }
  0x20   :  { %p1364_p1 = pnand %p1363_p0, %p1357_p11 }
  0x22   :  { %1367 = shalt.err (!%p1364_p1)
}
  0x23   :  { %65 = dma.hbm_to_vmem [thread:$0]  %s1678_s3, 640, %s1526_s12, [#allocation8], %s1466_s21, %s1466_s21, %s1467_s22  }
  0x24   :  { %s1468_s14 = smov [#allocation2]   ;;  %s1469_s16 = smov [#allocation6]  }
  0x25   :  { %s23_s15 = sshll.u32 %s1468_s14, 4  ;;  %s47_s17 = sshll.u32 %s1469_s16, 4  ;;  %s24_s15 = int_to_ptr.vmem [resolvable:$true] %s23_s15  ;;  %s1563_s17 = int_to_ptr.vmem [resolvable:$true] %s47_s17 }
  0x26   :  { %s1368_s20 = scalar_lea.hbm %s1675_s0, 256 }
  0x27   :  { %p1369_p2 = scmp.ne.s32.totalorder %s1675_s0, %s1368_s20  ;;  %p1372_p3 = scmp.lt.u32.totalorder %s1368_s20, %s1675_s0 }
  0x29   :  { %p1374_p4 = pnand %p1372_p3, %p1369_p2 }
  0x2b   :  { %1377 = shalt.err (!%p1374_p4)
}
  0x2c   :  { %s1378_s3 = scalar_lea.vmem %s24_s15, 256  ;;  %p1383_p6 = scmp.lt.s32.totalorder %s24_s15, %s24_s15 }
  0x2d   :  { %p1379_p5 = scmp.ne.s32.totalorder %s24_s15, %s1378_s3  ;;  %p1384_p7 = scmp.lt.s32.totalorder %s1378_s3, %s1378_s3 }
  0x2f   :  { %p1385_p8 = por %p1384_p7, %p1383_p6 }
  0x31   :  { %p1386_p9 = pnand %p1385_p8, %p1379_p5 }
  0x33   :  { %1389 = shalt.err (!%p1386_p9)
}
  0x34   :  { %29 = dma.hbm_to_vmem [thread:$0]  %s1675_s0, 256, %s24_s15, [#allocation3], %s1466_s21, %s1466_s21, %s1467_s22  }
  0x35   :  { %s1390_s30 = scalar_lea.hbm %s1677_s2, 512 }
  0x36   :  { %p1391_p10 = scmp.ne.s32.totalorder %s1677_s2, %s1390_s30  ;;  %p1394_p11 = scmp.lt.u32.totalorder %s1390_s30, %s1677_s2 }
  0x38   :  { %p1396_p12 = pnand %p1394_p11, %p1391_p10 }
  0x3a   :  { %1399 = shalt.err (!%p1396_p12)
}
  0x3b   :  { %s1400_s14 = scalar_lea.vmem %s1563_s17, 512  ;;  %p1405_p0 = scmp.lt.s32.totalorder %s1563_s17, %s1563_s17 }
  0x3c   :  { %p1401_p13 = scmp.ne.s32.totalorder %s1563_s17, %s1400_s14  ;;  %p1406_p1 = scmp.lt.s32.totalorder %s1400_s14, %s1400_s14 }
  0x3e   :  { %p1407_p2 = por %p1406_p1, %p1405_p0 }
  0x40   :  { %p1408_p3 = pnand %p1407_p2, %p1401_p13 }
  0x42   :  { %1411 = shalt.err (!%p1408_p3)
}
  0x43   :  { %53 = dma.hbm_to_vmem [thread:$0]  %s1677_s2, 512, %s1563_s17, [#allocation5], %s1466_s21, %s1466_s21, %s1467_s22  }
  0x44   :  { %s1470_s16 = smov [#allocation9]   ;;  %s1471_s19 = smov [#allocation10]  }
  0x45   :  { %s73_s18 = sshll.u32 %s1470_s16, 4  ;;  %s87_s20 = sshll.u32 %s1471_s19, 4  ;;  %s74_s18 = int_to_ptr.vmem [resolvable:$true] %s73_s18  ;;  %s1600_s20 = int_to_ptr.vmem [resolvable:$true] %s87_s20 }
  0x46   :  { %s1412_s25 = scalar_lea.hbm %s1680_s5, 8192 }
  0x47   :  { %p1413_p4 = scmp.ne.s32.totalorder %s1680_s5, %s1412_s25  ;;  %p1416_p5 = scmp.lt.u32.totalorder %s1412_s25, %s1680_s5 }
  0x49   :  { %p1418_p6 = pnand %p1416_p5, %p1413_p4 }
  0x4b   :  { %1421 = shalt.err (!%p1418_p6)
}
  0x4c   :  { %s1422_s2 = scalar_lea.vmem %s74_s18, 8192  ;;  %p1427_p8 = scmp.lt.s32.totalorder %s74_s18, %s74_s18 }
  0x4d   :  { %p1423_p7 = scmp.ne.s32.totalorder %s74_s18, %s1422_s2  ;;  %p1428_p9 = scmp.lt.s32.totalorder %s1422_s2, %s1422_s2 }
  0x4f   :  { %p1429_p10 = por %p1428_p9, %p1427_p8 }
  0x51   :  { %p1430_p11 = pnand %p1429_p10, %p1423_p7 }
  0x53   :  { %1433 = shalt.err (!%p1430_p11)
}
  0x54   :  { %79 = dma.hbm_to_vmem [thread:$0]  %s1680_s5, 8192, %s74_s18, [#allocation8], %s1466_s21, %s1466_s21, %s1467_s22  }
  0x55   :  { %s1434_s11 = scalar_lea.hbm %s1682_s7, 2048 }
  0x56   :  { %p1435_p12 = scmp.ne.s32.totalorder %s1682_s7, %s1434_s11  ;;  %p1438_p13 = scmp.lt.u32.totalorder %s1434_s11, %s1682_s7 }
  0x58   :  { %p1440_p0 = pnand %p1438_p13, %p1435_p12 }
  0x5a   :  { %1443 = shalt.err (!%p1440_p0)
}
  0x5b   :  { %s1444_s0 = scalar_lea.vmem %s1600_s20, 2048  ;;  %p1449_p2 = scmp.lt.s32.totalorder %s1600_s20, %s1600_s20 }
  0x5c   :  { %p1445_p1 = scmp.ne.s32.totalorder %s1600_s20, %s1444_s0  ;;  %p1450_p3 = scmp.lt.s32.totalorder %s1444_s0, %s1444_s0 }
  0x5e   :  { %p1451_p4 = por %p1450_p3, %p1449_p2 }
  0x60   :  { %p1452_p5 = pnand %p1451_p4, %p1445_p1 }
  0x62   :  { %1455 = shalt.err (!%p1452_p5)
}
  0x63   :  { %s1472_s5 = smov 64   ;;  %s1473_s21 = smov 4  }
  0x64   :  { %93 = dma.hbm_to_vmem [thread:$0]  %s1682_s7, 2048, %s1600_s20, [#allocation11], %s1472_s5, %s1472_s5, %s1473_s21  }
  0x65   :  { %1456 = dma.done.wait [#allocation3], 256  }
  0x66   :  { %1457 = vsyncadd [#allocation3], 4294967040 }
  0x67   :  { %1458 = dma.done.wait [#allocation5], 768  }
  0x68   :  { %1459 = vsyncadd [#allocation5], 4294966528 }
  0x69   :  { %1460 = dma.done.wait [#allocation8], 8832  }
  0x6a   :  { %1461 = vsyncadd [#allocation8], 4294958464 }
  0x6b   :  { %1462 = dma.done.wait [#allocation11], 2048  }
  0x6c   :  { %1463 = vsyncadd [#allocation11], 4294965248  ;;  %v1474_v0 = vmov 0   ;;  %vm144_vm0 = vcmask 1046528   ;;  %vm145_vm1 = vcmask 1047552   ;;  %v1475_v1 = vmov 65535  }
  0x6d   :  { %186 = vmatprep.mubr.bf16.mxu0 %v1474_v0  ;;  %v146_v2 = vsel %vm144_vm0, 4294967295, %v1475_v1  ;;  %v1190_v3 = vld [vmem:[#allocation6 + $0x4] ss:$8 sps:$4 sm:$0xff]   ;;  %v1192_v4 = vld [vmem:[#allocation6] ss:$8 sps:$4 sm:$0xff]   ;;  %vm234_vm2 = vcmask 1040384  }
  0x6e   :  { %v147_v5 = vsel %vm145_vm1, %v146_v2, 0  ;;  %154 = vmatprep.subr.bf16.mxu0 %v1190_v3  ;;  %v1193_v6 = vld [vmem:[#allocation6 + $0x14] ss:$8 sps:$4 sm:$0xff]   ;;  %v1195_v7 = vld [vmem:[#allocation6 + $0x10] ss:$8 sps:$4 sm:$0xff]   ;;  %v115_v8 = vld [vmem:[#allocation2] sm:$0xff] }
  0x6f   :  { %155 = vmatpush1.bf16.msra.mxu0 %v1192_v4  ;;  %v116_v9 = vld [vmem:[#allocation2 + $0x8] sm:$0xff]  ;;  %v152_v10 = vand.u32 %v1193_v6, %v147_v5  ;;  %v149_v11 = vand.u32 %v1195_v7, %v147_v5  ;;  %vm235_vm3 = vcmask 1041408   ;;  %v236_v13 = vsel %vm234_vm2, 4294967295, %v1475_v1  ;;  %v1201_v16 = vld [vmem:[#allocation7 + $0x14] ss:$8 sps:$4 sm:$0xff]  }
  0x70   :  { %v1198_v12 = vld [vmem:[#allocation7 + $0x4] ss:$8 sps:$4 sm:$0xff]   ;;  %v117_v14 = vpack.c.bf16 %v116_v9, %v115_v8  ;;  %v1196_v15 = vld [vmem:[#allocation7] ss:$8 sps:$4 sm:$0xff]   ;;  %vm140_vm4 = vcmask 252928   ;;  %v237_v21 = vsel %vm235_vm3, %v236_v13, 0 }
  0x71   :  { %156 = vmatprep.subr.bf16.mxu0 %v152_v10  ;;  %v204_v17 = vld [vmem:[#allocation7 + $0x20] sm:$0x33]  ;;  %v1204_v18 = vld [vmem:[#allocation9 + $0x4] ss:$8 sps:$4 sm:$0xff]   ;;  %v1206_v20 = vld [vmem:[#allocation9] ss:$8 sps:$4 sm:$0xff]  }
  0x72   :  { %v1065_v19 = vcombine.high %v204_v17, %v204_v17  ;;  %725 = vmatprep.subr.bf16.mxu1 %v1204_v18  ;;  %v1207_v22 = vld [vmem:[#allocation9 + $0x14] ss:$8 sps:$4 sm:$0xff]   ;;  %v1199_v23 = vld [vmem:[#allocation7 + $0x10] ss:$8 sps:$4 sm:$0xff]   ;;  %v1064_v25 = vcombine.low %v204_v17, %v204_v17  ;;  %v1210_v26 = vld [vmem:[#allocation9 + $0x24] ss:$8 sps:$4 sm:$0xff]  }
  0x73   :  { %157 = vmatpush1.bf16.msra.mxu0 %v149_v11  ;;  %726 = vmatpush1.bf16.msra.mxu1 %v1206_v20  ;;  %v1209_v24 = vld [vmem:[#allocation9 + $0x10] ss:$8 sps:$4 sm:$0xff]   ;;  %v197_v28 = vld [vmem:[#allocation4] sm:$0xff]  ;;  %v1213_v32 = vld [vmem:[#allocation9 + $0x34] ss:$8 sps:$4 sm:$0xff]   ;;  %vm230_vm5 = vcmask 285696  }
  0x74   :  { %244 = vmatprep.subr.bf16.mxu0 %v1198_v12  ;;  %v242_v27 = vand.u32 %v1065_v19, %v237_v21  ;;  %727 = vmatprep.subr.bf16.mxu1 %v1207_v22  ;;  %v1212_v29 = vld [vmem:[#allocation9 + $0x20] ss:$8 sps:$4 sm:$0xff]   ;;  %v239_v30 = vand.u32 %v1064_v25, %v237_v21  ;;  %v198_v31 = vld [vmem:[#allocation4 + $0x8] sm:$0xff]  ;;  %v1217_v33 = vld [vmem:[#allocation9 + $0x104] ss:$8 sps:$4 sm:$0xff]   ;;  %vm1003_vm6 = vcmask 523264  }
  0x75   :  { %v199_v34 = vpack.c.bf16 %v198_v31, %v197_v28  ;;  %v1215_v35 = vld [vmem:[#allocation9 + $0x100] ss:$8 sps:$4 sm:$0xff]   ;;  %v1218_v36 = vld [vmem:[#allocation9 + $0x30] ss:$8 sps:$4 sm:$0xff]   ;;  %v1219_v37 = vld [vmem:[#allocation9 + $0x44] ss:$8 sps:$4 sm:$0xff]   ;;  %v289_v28 = vlaneseq }
  0x76   :  { %1059 = vmatmul.mubr.msk.bf16.vlgmr.msra.gmra.mrb[0].mxu0 %vm140_vm4, %v117_v14  ;;  %v1223_v38 = vld [vmem:[#allocation9 + $0x114] ss:$8 sps:$4 sm:$0xff]   ;;  %v1224_v39 = vld [vmem:[#allocation9 + $0x40] ss:$8 sps:$4 sm:$0xff]   ;;  %v1221_v40 = vld [vmem:[#allocation9 + $0x110] ss:$8 sps:$4 sm:$0xff]  }
  0x77   :  { %245 = vmatpush1.bf16.msra.mxu0 %v1196_v15  ;;  %276 = vmatprep.mubr.bf16.mxu0 %v1474_v0  ;;  %v1225_v41 = vld [vmem:[#allocation9 + $0x54] ss:$8 sps:$4 sm:$0xff]   ;;  %v1229_v42 = vld [vmem:[#allocation9 + $0x124] ss:$8 sps:$4 sm:$0xff]   ;;  %v1227_v43 = vld [vmem:[#allocation9 + $0x120] ss:$8 sps:$4 sm:$0xff]  }
  0x78   :  { %246 = vmatprep.subr.bf16.mxu0 %v1201_v16  ;;  %728 = vmatpush1.bf16.msra.mxu1 %v1209_v24  ;;  %v1230_v44 = vld [vmem:[#allocation9 + $0x50] ss:$8 sps:$4 sm:$0xff]   ;;  %v1231_v45 = vld [vmem:[#allocation9 + $0x64] ss:$8 sps:$4 sm:$0xff]   ;;  %v1235_v46 = vld [vmem:[#allocation9 + $0x134] ss:$8 sps:$4 sm:$0xff]  }
  0x79   :  { %729 = vmatprep.subr.bf16.mxu1 %v1210_v26  ;;  %v1236_v47 = vld [vmem:[#allocation9 + $0x60] ss:$8 sps:$4 sm:$0xff]   ;;  %v1233_v48 = vld [vmem:[#allocation9 + $0x130] ss:$8 sps:$4 sm:$0xff]   ;;  %v1237_v49 = vld [vmem:[#allocation9 + $0x74] ss:$8 sps:$4 sm:$0xff]  }
  0x7a   :  { %v1241_v50 = vld [vmem:[#allocation9 + $0x144] ss:$8 sps:$4 sm:$0xff]   ;;  %v1239_v51 = vld [vmem:[#allocation9 + $0x140] ss:$8 sps:$4 sm:$0xff]   ;;  %v1242_v52 = vld [vmem:[#allocation9 + $0x70] ss:$8 sps:$4 sm:$0xff]  }
  0x7b   :  { %247 = vmatpush1.bf16.msra.mxu0 %v1199_v23  ;;  %v1243_v53 = vld [vmem:[#allocation9 + $0x84] ss:$8 sps:$4 sm:$0xff]   ;;  %v1247_v54 = vld [vmem:[#allocation9 + $0x154] ss:$8 sps:$4 sm:$0xff]   ;;  %v1245_v55 = vld [vmem:[#allocation9 + $0x150] ss:$8 sps:$4 sm:$0xff]  }
  0x7c   :  { %248 = vmatprep.subr.bf16.mxu0 %v242_v27  ;;  %730 = vmatpush1.bf16.msra.mxu1 %v1212_v29  ;;  %v1248_v56 = vld [vmem:[#allocation9 + $0x80] ss:$8 sps:$4 sm:$0xff]   ;;  %v1249_v57 = vld [vmem:[#allocation9 + $0x94] ss:$8 sps:$4 sm:$0xff]   ;;  %v1253_v58 = vld [vmem:[#allocation9 + $0x164] ss:$8 sps:$4 sm:$0xff]  }
  0x7d   :  { %731 = vmatprep.subr.bf16.mxu1 %v1213_v32  ;;  %v1254_v59 = vld [vmem:[#allocation9 + $0x90] ss:$8 sps:$4 sm:$0xff]   ;;  %v1251_v60 = vld [vmem:[#allocation9 + $0x160] ss:$8 sps:$4 sm:$0xff]   ;;  %v1255_v61 = vld [vmem:[#allocation9 + $0xa4] ss:$8 sps:$4 sm:$0xff]  }
  0x7e   :  { %v1259_v62 = vld [vmem:[#allocation9 + $0x174] ss:$8 sps:$4 sm:$0xff]   ;;  %v1260_v63 = vld [vmem:[#allocation9 + $0xa0] ss:$8 sps:$4 sm:$0xff]   ;;  %v1257_v0 = vld [vmem:[#allocation9 + $0x170] ss:$8 sps:$4 sm:$0xff]  }
  0x7f   :  { %249 = vmatpush1.bf16.msra.mxu0 %v239_v30  ;;  %v1261_v1 = vld [vmem:[#allocation9 + $0xb4] ss:$8 sps:$4 sm:$0xff]   ;;  %v1265_v2 = vld [vmem:[#allocation9 + $0x184] ss:$8 sps:$4 sm:$0xff]   ;;  %v1266_v3 = vld [vmem:[#allocation9 + $0xb0] ss:$8 sps:$4 sm:$0xff]  }
  0x80   :  { %768 = vmatprep.subr.bf16.mxu0 %v1217_v33  ;;  %732 = vmatpush1.bf16.msra.mxu1 %v1218_v36  ;;  %v1263_v4 = vld [vmem:[#allocation9 + $0x180] ss:$8 sps:$4 sm:$0xff]   ;;  %v1267_v5 = vld [vmem:[#allocation9 + $0xc4] ss:$8 sps:$4 sm:$0xff]   ;;  %v1271_v6 = vld [vmem:[#allocation9 + $0x194] ss:$8 sps:$4 sm:$0xff]  }
  0x81   :  { %733 = vmatprep.subr.bf16.mxu1 %v1219_v37  ;;  %v1272_v7 = vld [vmem:[#allocation9 + $0xc0] ss:$8 sps:$4 sm:$0xff]   ;;  %v1269_v8 = vld [vmem:[#allocation9 + $0x190] ss:$8 sps:$4 sm:$0xff]   ;;  %v1273_v9 = vld [vmem:[#allocation9 + $0xd4] ss:$8 sps:$4 sm:$0xff]  }
  0x82   :  { %1066 = vmatmul.mubr.msk.bf16.vlgmr.msra.gmra.mrb[4].mxu0 %vm230_vm5, %v199_v34  ;;  %v1277_v10 = vld [vmem:[#allocation9 + $0x1a4] ss:$8 sps:$4 sm:$0xff]   ;;  %v1275_v11 = vld [vmem:[#allocation9 + $0x1a0] ss:$8 sps:$4 sm:$0xff]   ;;  %v1278_v12 = vld [vmem:[#allocation9 + $0xd0] ss:$8 sps:$4 sm:$0xff]  }
  0x83   :  { %769 = vmatpush1.bf16.msra.mxu0 %v1215_v35  ;;  %v1279_v13 = vld [vmem:[#allocation9 + $0xe4] ss:$8 sps:$4 sm:$0xff]   ;;  %v1283_v14 = vld [vmem:[#allocation9 + $0x1b4] ss:$8 sps:$4 sm:$0xff]   ;;  %v1281_v15 = vld [vmem:[#allocation9 + $0x1b0] ss:$8 sps:$4 sm:$0xff]  }
  0x84   :  { %770 = vmatprep.subr.bf16.mxu0 %v1223_v38  ;;  %734 = vmatpush1.bf16.msra.mxu1 %v1224_v39  ;;  %v1284_v16 = vld [vmem:[#allocation9 + $0xe0] ss:$8 sps:$4 sm:$0xff]   ;;  %v1285_v17 = vld [vmem:[#allocation9 + $0xf4] ss:$8 sps:$4 sm:$0xff]   ;;  %v1289_v18 = vld [vmem:[#allocation9 + $0x1c4] ss:$8 sps:$4 sm:$0xff]  }
  0x85   :  { %735 = vmatprep.subr.bf16.mxu1 %v1225_v41  ;;  %v1287_v19 = vld [vmem:[#allocation9 + $0x1c0] ss:$8 sps:$4 sm:$0xff]   ;;  %v1290_v20 = vld [vmem:[#allocation9 + $0xf0] ss:$8 sps:$4 sm:$0xff]   ;;  %v1293_v21 = vld [vmem:[#allocation9 + $0x1d4] ss:$8 sps:$4 sm:$0xff]  }
  0x86   :  { %v1291_v22 = vld [vmem:[#allocation9 + $0x1d0] ss:$8 sps:$4 sm:$0xff]   ;;  %v1296_v23 = vld [vmem:[#allocation9 + $0x1e4] ss:$8 sps:$4 sm:$0xff]   ;;  %v1294_v24 = vld [vmem:[#allocation9 + $0x1e0] ss:$8 sps:$4 sm:$0xff]  }
  0x87   :  { %771 = vmatpush1.bf16.msra.mxu0 %v1221_v40  ;;  %v1299_v25 = vld [vmem:[#allocation9 + $0x1f4] ss:$8 sps:$4 sm:$0xff]   ;;  %v1297_v26 = vld [vmem:[#allocation9 + $0x1f0] ss:$8 sps:$4 sm:$0xff]   ;;  %v1300_v27 = vld [vmem:[#allocation10 + $0x40] sm:$0xff]   ;;  %v1636_v29 = vshrl.u32 %v289_v28, 7 }
  0x88   :  { %772 = vmatprep.subr.bf16.mxu0 %v1229_v42  ;;  %736 = vmatpush1.bf16.msra.mxu1 %v1230_v44  ;;  %v287_v31 = vld [vmem:[%s1679_s4] sm:$0xf]  ;;  %vm1044_vm7 = vcmask 7168  }
  0x89   :  { %737 = vmatprep.subr.bf16.mxu1 %v1231_v45  ;;  %v291_v30 = vsub.s32 0, %v1636_v29  ;;  %v295_v32 = vsub.s32 1, %v1636_v29  ;;  %v299_v45 = vsub.s32 2, %v1636_v29 }
  0x8b   :  { %773 = vmatpush1.bf16.msra.mxu0 %v1227_v43  ;;  %v292_v33 = vrot.slane %v287_v31, %v291_v30  ;;  %v296_v34 = vrot.slane %v287_v31, %v295_v32 }
  0x8c   :  { %774 = vmatprep.subr.bf16.mxu0 %v1235_v46  ;;  %738 = vmatpush1.bf16.msra.mxu1 %v1236_v47 }
  0x8d   :  { %739 = vmatprep.subr.bf16.mxu1 %v1237_v49 }
  0x8f   :  { %775 = vmatpush1.bf16.msra.mxu0 %v1233_v48  ;;  %v303_v48 = vsub.s32 3, %v1636_v29 }
  0x90   :  { %776 = vmatprep.subr.bf16.mxu0 %v1241_v50  ;;  %740 = vmatpush1.bf16.msra.mxu1 %v1242_v52  ;;  %v300_v52 = vrot.slane %v287_v31, %v299_v45 }
  0x91   :  { %741 = vmatprep.subr.bf16.mxu1 %v1243_v53  ;;  %v1302_v53 = vld [vmem:[#allocation10 + $0x48] sm:$0xff]  }
  0x93   :  { %777 = vmatpush1.bf16.msra.mxu0 %v1239_v51  ;;  %v1301_v51 = vld [vmem:[#allocation10] sm:$0xff]  }
  0x94   :  { %778 = vmatprep.subr.bf16.mxu0 %v1247_v54  ;;  %742 = vmatpush1.bf16.msra.mxu1 %v1248_v56  ;;  %v304_v54 = vrot.slane %v287_v31, %v303_v48  ;;  %v1303_v56 = vld [vmem:[#allocation10 + $0x8] sm:$0xff]  }
  0x95   :  { %743 = vmatprep.subr.bf16.mxu1 %v1249_v57 }
  0x97   :  { %779 = vmatpush1.bf16.msra.mxu0 %v1245_v55 }
  0x98   :  { %780 = vmatprep.subr.bf16.mxu0 %v1253_v58  ;;  %744 = vmatpush1.bf16.msra.mxu1 %v1254_v59  ;;  %v1304_v59 = vld [vmem:[#allocation10 + $0x50] sm:$0xff]  }
  0x99   :  { %745 = vmatprep.subr.bf16.mxu1 %v1255_v61 }
  0x9b   :  { %781 = vmatpush1.bf16.msra.mxu0 %v1251_v60 }
  0x9c   :  { %782 = vmatprep.subr.bf16.mxu0 %v1259_v62  ;;  %746 = vmatpush1.bf16.msra.mxu1 %v1260_v63 }
  0x9d   :  { %747 = vmatprep.subr.bf16.mxu1 %v1261_v1 }
  0x9f   :  { %783 = vmatpush1.bf16.msra.mxu0 %v1257_v0 }
  0xa0   :  { %784 = vmatprep.subr.bf16.mxu0 %v1265_v2  ;;  %748 = vmatpush1.bf16.msra.mxu1 %v1266_v3 }
  0xa1   :  { %749 = vmatprep.subr.bf16.mxu1 %v1267_v5 }
  0xa3   :  { %785 = vmatpush1.bf16.msra.mxu0 %v1263_v4 }
  0xa4   :  { %786 = vmatprep.subr.bf16.mxu0 %v1271_v6  ;;  %750 = vmatpush1.bf16.msra.mxu1 %v1272_v7  ;;  %v1305_v7 = vld [vmem:[#allocation10 + $0x10] sm:$0xff]  }
  0xa5   :  { %751 = vmatprep.subr.bf16.mxu1 %v1273_v9  ;;  %v1307_v9 = vld [vmem:[#allocation10 + $0x18] sm:$0xff]  }
  0xa7   :  { %787 = vmatpush1.bf16.msra.mxu0 %v1269_v8  ;;  %v1306_v8 = vld [vmem:[#allocation10 + $0x58] sm:$0xff]  }
  0xa8   :  { %788 = vmatprep.subr.bf16.mxu0 %v1277_v10  ;;  %752 = vmatpush1.bf16.msra.mxu1 %v1278_v12  ;;  %v1308_v10 = vld [vmem:[#allocation10 + $0x60] sm:$0xff]   ;;  %v1310_v12 = vld [vmem:[#allocation10 + $0x68] sm:$0xff]  }
  0xa9   :  { %753 = vmatprep.subr.bf16.mxu1 %v1279_v13  ;;  %v1311_v13 = vld [vmem:[#allocation10 + $0x28] sm:$0xff]  }
  0xab   :  { %789 = vmatpush1.bf16.msra.mxu0 %v1275_v11  ;;  %v1309_v11 = vld [vmem:[#allocation10 + $0x20] sm:$0xff]  }
  0xac   :  { %790 = vmatprep.subr.bf16.mxu0 %v1283_v14  ;;  %754 = vmatpush1.bf16.msra.mxu1 %v1284_v16  ;;  %v1312_v14 = vld [vmem:[#allocation10 + $0x70] sm:$0xff]   ;;  %v1314_v16 = vld [vmem:[#allocation10 + $0x78] sm:$0xff]  }
  0xad   :  { %755 = vmatprep.subr.bf16.mxu1 %v1285_v17  ;;  %v1315_v17 = vld [vmem:[#allocation10 + $0x38] sm:$0xff]  }
  0xaf   :  { %791 = vmatpush1.bf16.msra.mxu0 %v1281_v15  ;;  %v1313_v15 = vld [vmem:[#allocation10 + $0x30] sm:$0xff]  }
  0xb0   :  { %792 = vmatprep.subr.bf16.mxu0 %v1289_v18  ;;  %756 = vmatpush1.bf16.msra.mxu1 %v1290_v20  ;;  %v393_v18 = vld [vmem:[%s1681_s6] sm:$0x3] }
  0xb1   :  { %1148 = vmatprep.subr.bf16.mxu1 %v1300_v27 }
  0xb3   :  { %793 = vmatpush1.bf16.msra.mxu0 %v1287_v19  ;;  %v398_v19 = vrot.slane %v393_v18, %v291_v30 }
  0xb4   :  { %794 = vmatprep.subr.bf16.mxu0 %v1293_v21 }
  0xb7   :  { %795 = vmatpush1.bf16.msra.mxu0 %v1291_v22 }
  0xb8   :  { %796 = vmatprep.subr.bf16.mxu0 %v1296_v23 }
  0xbb   :  { %797 = vmatpush1.bf16.msra.mxu0 %v1294_v24 }
  0xbc   :  { %798 = vmatprep.subr.bf16.mxu0 %v1299_v25 }
  0xbf   :  { %799 = vmatpush1.bf16.msra.mxu0 %v1297_v26  ;;  %v402_v26 = vrot.slane %v393_v18, %v295_v32  ;;  %v1131_v32 = vld [vmem:[%s1683_s8] ss:$0 sm:$0xff] }
 0x149   :  { %v188_v35 = vpop.f32.mrb[0].mxu0 }
 0x14a   :  { %v309_v36 = vadd.f32 %v292_v33, %v188_v35  ;;  %v190_v37 = vpop.f32.mrb[1].mxu0 }
 0x14b   :  { %v310_v38 = vadd.f32 %v296_v34, %v190_v37  ;;  %v192_v39 = vpop.f32.mrb[2].mxu0 }
 0x14c   :  { %v317_v40 = vmax.f32 %v309_v36, 0.0  ;;  %v313_v41 = vadd.f32 %v292_v33, %v192_v39  ;;  %v194_v42 = vpop.f32.mrb[3].mxu0 }
 0x14d   :  { %v314_v43 = vadd.f32 %v296_v34, %v194_v42  ;;  %v318_v46 = vmax.f32 %v310_v38, 0.0 }
 0x14e   :  { %v321_v44 = vmax.f32 %v313_v41, 0.0 }
 0x14f   :  { %v322_v47 = vmax.f32 %v314_v43, 0.0 }
 0x150   :  { %v325_v49 = vpack.c.bf16 %v321_v44, %v317_v40 }
 0x151   :  { %v326_v50 = vpack.c.bf16 %v322_v47, %v318_v46 }
 0x153   :  { %757 = vmatprep.mubr.bf16.mxu1 %v326_v50 }
 0x154   :  { %758 = vmatmul.mubr.bf16.vlgmr.msra.gmra.mrb[0].mxu1 %v325_v49 }
 0x155   :  { %v278_v55 = vpop.f32.mrb[4].mxu0  ;;  %1149 = vmatpush3.bf16.msra.mxu1 %v1301_v51 }
 0x156   :  { %v311_v57 = vadd.f32 %v300_v52, %v278_v55  ;;  %v280_v58 = vpop.f32.mrb[5].mxu0  ;;  %1150 = vmatprep.subr.bf16.mxu1 %v1302_v53 }
 0x157   :  { %v312_v60 = vadd.f32 %v304_v54, %v280_v58  ;;  %v282_v61 = vpop.f32.mrb[6].mxu0 }
 0x158   :  { %v315_v62 = vadd.f32 %v300_v52, %v282_v61  ;;  %v284_v63 = vpop.f32.mrb[7].mxu0  ;;  %v319_v1 = vmax.f32 %v311_v57, 0.0 }
 0x159   :  { %v316_v0 = vadd.f32 %v304_v54, %v284_v63  ;;  %1151 = vmatpush3.bf16.msra.mxu1 %v1303_v56  ;;  %v320_v3 = vmax.f32 %v312_v60, 0.0 }
 0x15a   :  { %v323_v2 = vmax.f32 %v315_v62, 0.0  ;;  %1152 = vmatprep.subr.bf16.mxu1 %v1304_v59 }
 0x15b   :  { %v324_v4 = vmax.f32 %v316_v0, 0.0 }
 0x15c   :  { %v327_v5 = vpack.c.bf16 %v323_v2, %v319_v1 }
 0x15d   :  { %v328_v6 = vpack.c.bf16 %v324_v4, %v320_v3  ;;  %1153 = vmatpush3.bf16.msra.mxu1 %v1305_v7 }
 0x15e   :  { %1154 = vmatprep.subr.bf16.mxu1 %v1306_v8 }
 0x15f   :  { %800 = vmatprep.mubr.bf16.mxu0 %v328_v6 }
 0x160   :  { %801 = vmatmul.mubr.bf16.vlgmr.msra.gmra.mrb[8].mxu0 %v327_v5 }
 0x161   :  { %1155 = vmatpush3.bf16.msra.mxu1 %v1307_v9 }
 0x162   :  { %1156 = vmatprep.subr.bf16.mxu1 %v1308_v10 }
 0x165   :  { %1157 = vmatpush3.bf16.msra.mxu1 %v1309_v11 }
 0x166   :  { %1158 = vmatprep.subr.bf16.mxu1 %v1310_v12 }
 0x169   :  { %1159 = vmatpush3.bf16.msra.mxu1 %v1311_v13 }
 0x16a   :  { %1160 = vmatprep.subr.bf16.mxu1 %v1312_v14 }
 0x16d   :  { %1161 = vmatpush3.bf16.msra.mxu1 %v1313_v15 }
 0x16e   :  { %1162 = vmatprep.subr.bf16.mxu1 %v1314_v16 }
 0x171   :  { %1163 = vmatpush3.bf16.msra.mxu1 %v1315_v17 }
 0x227   :  { %v759_v20 = vpop.f32.mrb[0].mxu1 }
 0x228   :  { %v760_v21 = vadd.f32 %v759_v20, %v398_v19  ;;  %v761_v22 = vpop.f32.mrb[1].mxu1 }
 0x229   :  { %v763_v23 = vpop.f32.mrb[2].mxu1  ;;  %v762_v27 = vadd.f32 %v761_v22, %v402_v26 }
 0x22a   :  { %v764_v24 = vadd.f32 %v763_v23, %v398_v19  ;;  %v765_v25 = vpop.f32.mrb[3].mxu1 }
 0x22b   :  { %v766_v34 = vadd.f32 %v765_v25, %v402_v26 }
 0x233   :  { %v802_v28 = vpop.f32.mrb[8].mxu0 }
 0x234   :  { %v803_v31 = vadd.f32 %v802_v28, %v760_v21  ;;  %v804_v33 = vpop.f32.mrb[9].mxu0 }
 0x235   :  { %v805_v35 = vadd.f32 %v804_v33, %v762_v27  ;;  %v806_v36 = vpop.f32.mrb[10].mxu0 }
 0x236   :  { %v807_v37 = vadd.f32 %v806_v36, %v764_v24  ;;  %v808_v38 = vpop.f32.mrb[11].mxu0  ;;  %v811_v30 = vmax.f32 %v803_v31, 0.0 }
 0x237   :  { %v809_v39 = vadd.f32 %v808_v38, %v766_v34  ;;  %v812_v41 = vmax.f32 %v805_v35, 0.0 }
 0x238   :  { %v813_v40 = vmax.f32 %v807_v37, 0.0 }
 0x239   :  { %v814_v42 = vmax.f32 %v809_v39, 0.0 }
 0x23a   :  { %v815_v43 = vpack.c.bf16 %v813_v40, %v811_v30 }
 0x23b   :  { %v816_v44 = vpack.c.bf16 %v814_v42, %v812_v41 }
 0x23d   :  { %984 = vmatprep.mubr.bf16.mxu1 %v816_v44 }
 0x23e   :  { %985 = vmatmul.mubr.bf16.vlgmr.msra.gmra.mrb[4].mxu1 %v815_v43 }
 0x311   :  { %v1164_v29 = vpop.f32.mrb[4].mxu1 }
 0x312   :  { %v1165_v45 = vpop.f32.mrb[5].mxu1 }
 0x313   :  { %v1166_v46 = vadd.f32 %v1165_v45, %v1164_v29  ;;  %v1167_v47 = vpop.f32.mrb[6].mxu1 }
 0x314   :  { %v1168_v48 = vpop.f32.mrb[7].mxu1 }
 0x315   :  { %v987_v49 = vadd.f32 %v1166_v46, %v1131_v32  ;;  %v1169_v50 = vadd.f32 %v1168_v48, %v1167_v47 }
 0x317   :  { %v990_v51 = vadd.f32 %v1169_v50, %v1131_v32  ;;  %995 = vrot.lane.b32.xlu1 %v987_v49, %s1472_s5  ;;  %v1010_v52 = vmul.f32 %v987_v49, %v987_v49 }
 0x319   :  { %1020 = vrot.lane.b32.xlu0 %v1010_v52, %s1472_s5  ;;  %v1011_v53 = vmul.f32 %v990_v51, %v990_v51  ;;  %v1012_v54 = vsel %vm1003_vm6, %v1010_v52, 0.0 }
 0x31b   :  { %997 = vrot.lane.b32.xlu1 %v990_v51, %s1472_s5  ;;  %v1015_v55 = vsel %vm1003_vm6, %v1011_v53, 0.0 }
 0x31d   :  { %1022 = vrot.lane.b32.xlu0 %v1011_v53, %s1472_s5 }
 0x33c   :  { %1013 = vadd.xlane.f32.xlu0 %v1012_v54 }
 0x33f   :  { %1016 = vadd.xlane.f32.xlu1 %v1015_v55 }
 0x389   :  { %v996_v56 = vpop.permute.xlu1 %995 }
 0x38a   :  { %v1001_v57 = vmul.f32 %v996_v56, %v987_v49 }
 0x38b   :  { %v1021_v58 = vpop.permute.xlu0 %1020 }
 0x38c   :  { %v1004_v59 = vsel %vm1003_vm6, %v1001_v57, 0.0  ;;  %v1026_v60 = vsel %vm1003_vm6, %v1021_v58, 0.0 }
 0x38d   :  { %1005 = vadd.xlane.f32.xlu1 %v1004_v59  ;;  %v998_v61 = vpop.permute.xlu1 %997  ;;  %1027 = vadd.xlane.f32.xlu0 %v1026_v60 }
 0x38e   :  { %v1002_v63 = vmul.f32 %v998_v61, %v990_v51 }
 0x38f   :  { %v1023_v62 = vpop.permute.xlu0 %1022 }
 0x390   :  { %v1029_v0 = vsel %vm1003_vm6, %v1023_v62, 0.0  ;;  %v1007_v1 = vsel %vm1003_vm6, %v1002_v63, 0.0 }
 0x391   :  { %1030 = vadd.xlane.f32.xlu0 %v1029_v0 }
 0x395   :  { %1008 = vadd.xlane.f32.xlu0 %v1007_v1 }
 0x3c9   :  { %v1014_v2 = vpop.xlane.xlu0 %1013 }
 0x3ca   :  { %v1032_v3 = vmax.f32 %v1014_v2, 1e-24 }
 0x3cc   :  { %v1017_v4 = vpop.xlane.xlu1 %1016  ;;  %1316 = vrsqrt.f32 %v1032_v3 }
 0x3cd   :  { %v1033_v6 = vmax.f32 %v1017_v4, 1e-24 }
 0x3d6   :  { %v1317_v11 = vpop.eup %1316 }
 0x41a   :  { %v1028_v5 = vpop.xlane.xlu0 %1027  ;;  %v1006_v10 = vpop.xlane.xlu1 %1005 }
 0x41b   :  { %v1036_v7 = vmax.f32 %v1028_v5, 1e-24  ;;  %v1040_v12 = vmul.f32 %v1317_v11, %v1006_v10 }
 0x41d   :  { %1318 = vrsqrt.f32 %v1036_v7 }
 0x41e   :  { %v1031_v8 = vpop.xlane.xlu0 %1030  ;;  %1320 = vrsqrt.f32 %v1033_v6 }
 0x41f   :  { %v1037_v9 = vmax.f32 %v1031_v8, 1e-24 }
 0x421   :  { %1322 = vrsqrt.f32 %v1037_v9 }
 0x422   :  { %v1009_v14 = vpop.xlane.xlu0 %1008 }
 0x427   :  { %v1319_v13 = vpop.eup %1318 }
 0x428   :  { %v1042_v15 = vmul.f32 %v1319_v13, %v1040_v12  ;;  %v1321_v16 = vpop.eup %1320 }
 0x429   :  { %v1041_v17 = vmul.f32 %v1321_v16, %v1009_v14 }
 0x42a   :  { %1045 = vst.msk [vmem:[%s1684_s9] sm:$0xff] %vm1044_vm7, %v1042_v15 }
 0x42b   :  { %v1323_v18 = vpop.eup %1322 }
 0x42c   :  { %v1043_v19 = vmul.f32 %v1323_v18, %v1041_v17 }
 0x42e   :  { %1046 = vst.msk [vmem:[%s1684_s9 + $0x8] sm:$0xff] %vm1044_vm7, %v1043_v19 }
 0x42f   :  { %1051 = vsyncpa [#allocation3], 1 }
 0x430   :  { %1052 = vsyncpa [#allocation5], 1 }
 0x431   :  { %1053 = vsyncpa [#allocation8], 1 }
 0x432   :  { %1054 = vsyncpa [#allocation11], 1 }

</bundles_post_ra>
